<compile_context>
chip_gen: v5e
topology: v5e:2x2
jax: 0.10.0
libtpu: 0.0.40
codegen_flags: <defaults>
</compile_context>

<pallas_src>
import math

import jax
import jax.numpy as jnp
from jax.experimental import pallas as pl
from jax.experimental.pallas import tpu as pltpu

# ----------------------------- config -----------------------------
B = 2            # batch
S = 8            # sequence length
H = 32           # hidden (d_model)
NH = 4           # attention heads
DK = H // NH     # per-head dim
FF = 4 * H       # feed-forward hidden
BS = B * S       # total tokens
EPS = 1e-6

# packed weight-slab column offsets: [Wq|Wk|Wv | Wo | W1 | W2^T]
QKV_OFF = 0
WO_OFF = 3 * H
W1_OFF = 4 * H
W2T_OFF = 4 * H + FF
W_COLS = 4 * H + 2 * FF          # 384
QKVO_COLS = 4 * H                # 128: lane-dense first weight tile [Wq|Wk|Wv|Wo]

# For real BERT dims on v5e/v6e/v7x set MXU_DTYPE = jnp.bfloat16 (cast only at the dot
# boundaries).  Kept f32 here so the toy-shape test matches the f32 PyTorch module
# tightly — at these shapes the kernel is overhead-bound, not MXU-throughput-bound.
MXU_DTYPE = jnp.float32


def _mx(a):
    return a.astype(MXU_DTYPE)


# ----------------------------- kernel -----------------------------
def transformer_block_kernel(x_ref, w_ref, vec_ref, o_ref):
    x = x_ref[...]                                     # (S, H) f32 — one batch's tokens

    # static views/loads from the packed slabs (static slices -> cheap)
    w_qkvo = w_ref[:, QKV_OFF:QKV_OFF + QKVO_COLS]     # (H, 4H)=(32,128), lane-dense tile
    wo = w_ref[:, WO_OFF:WO_OFF + H]                   # (DK-concat, H) view of Wo
    w1 = w_ref[:, W1_OFF:W1_OFF + FF]                  # (H, FF)
    w2t = w_ref[:, W2T_OFF:W2T_OFF + FF]               # (H, FF) == W2^T

    ln1_g = vec_ref[0:1, 0:H]
    ln1_b = vec_ref[1:2, 0:H]
    b_qkvo = vec_ref[2:3, :]                           # (1,128): [bq/sqrt(dk)|bk|bv|0..0]
    bo = vec_ref[3:4, 0:H]
    ln2_g = vec_ref[4:5, 0:H]
    ln2_b = vec_ref[5:6, 0:H]
    b1 = vec_ref[6:7, 0:FF]
    b2 = vec_ref[7:8, 0:H]

    def layer_norm(v, g, b):
        mean = jnp.mean(v, axis=-1, keepdims=True)
        # BERT-pytorch uses torch.std (unbiased, /(H-1)) and adds eps to std.
        var = jnp.sum((v - mean) ** 2, axis=-1, keepdims=True) * (1.0 / (H - 1))
        inv = pl.reciprocal(jnp.sqrt(var) + EPS)       # exact reciprocal, no VPU divide
        return g * (v - mean) * inv + b

    def gelu_tanh(v):
        c = math.sqrt(2.0 / math.pi)
        return 0.5 * v * (1.0 + jnp.tanh(c * (v + 0.044715 * v * v * v)))

    # contract last dims of both operands (A @ B^T) -> no explicit transpose
    cdims = (((1,), (1,)), ((), ()))

    # ---------------- sublayer 1: multi-head self-attention ----------------
    h1 = layer_norm(x, ln1_g, ln1_b)
    # (S,H)@(H,4H): full 128-lane RHS tile; cols 3H:4H (h1 @ Wo) are free MXU padding.
    qkvo = jnp.dot(_mx(h1), _mx(w_qkvo),
                   preferred_element_type=jnp.float32) + b_qkvo     # (S, 4H)
    q = qkvo[:, 0:H]            # Wq/bq pre-scaled by 1/sqrt(dk) at pack time
    k = qkvo[:, H:2 * H]
    v = qkvo[:, 2 * H:3 * H]

    # No mask needed: this grid step only contains one batch's tokens.
    attn_acc = jnp.zeros((S, H), jnp.float32)
    for hh in range(NH):                               # NH=4, static unroll
        sl = slice(hh * DK, (hh + 1) * DK)
        qh, kh, vh = q[:, sl], k[:, sl], v[:, sl]      # (S, DK)
        s = jax.lax.dot_general(_mx(qh), _mx(kh), cdims,
                                preferred_element_type=jnp.float32)  # (S, S)
        m = jnp.max(s, axis=-1, keepdims=True)
        e = jnp.exp(s - m)
        p = e * pl.reciprocal(jnp.sum(e, axis=-1, keepdims=True))    # exact recip
        ctx = jnp.dot(_mx(p), _mx(vh),
                      preferred_element_type=jnp.float32)            # (S, DK)
        # fold "concat heads then @ Wo" into a per-head accumulation.
        # TODO(synk): at real dims (DK=64) write ctx heads into a (S,H) buffer and do
        # a single (S,H)@(H,H) Wo matmul instead (better MXU K-utilization).
        wo_h = wo[hh * DK:(hh + 1) * DK, :]            # (DK, H)
        attn_acc = attn_acc + jnp.dot(_mx(ctx), _mx(wo_h),
                                      preferred_element_type=jnp.float32)
    x1 = x + attn_acc + bo                              # residual 1

    # ---------------- sublayer 2: position-wise feed-forward ----------------
    h2 = layer_norm(x1, ln2_g, ln2_b)
    ffh = jnp.dot(_mx(h2), _mx(w1),
                  preferred_element_type=jnp.float32) + b1          # (S, FF)
    act = gelu_tanh(ffh)
    ffo = jax.lax.dot_general(_mx(act), _mx(w2t), cdims,
                              preferred_element_type=jnp.float32) + b2
    o_ref[...] = x1 + ffo                               # residual 2


# ----------------------------- wrapper -----------------------------
@jax.jit
def transformer_block(x, packed):
    w_slab, vec_slab = packed
    x2d = x.reshape(BS, H)                              # free bitcast
    out2d = pl.pallas_call(
        transformer_block_kernel,
        out_shape=jax.ShapeDtypeStruct((BS, H), jnp.float32),
        grid=(B,),
        in_specs=[
            # per-step token tile: one batch's (S, H) rows
            pl.BlockSpec((S, H), lambda b: (b, 0)),
            # grid-invariant slabs: constant block index -> DMA'd once, kept resident
            pl.BlockSpec((H, W_COLS), lambda b: (0, 0)),
            pl.BlockSpec((8, FF), lambda b: (0, 0)),
        ],
        out_specs=pl.BlockSpec((S, H), lambda b: (b, 0)),
        compiler_params=pltpu.CompilerParams(
            # independent batches -> shardable across v7x's two TensorCores
            dimension_semantics=("parallel",),
            # explicit VMEM budget (fits v5e/v6e/v7x; toy working set is ~60 KB)
            vmem_limit_bytes=32 * 1024 * 1024),
    )(x2d, w_slab, vec_slab)
    return out2d.reshape(B, S, H)


# ------------------------ parameter packing ------------------------
def pack_params(params):
    """One-time static transform: fold 1/sqrt(dk) into Wq/bq, transpose W2,
    and pack everything into two lane-friendly slabs."""
    (ln1_g, ln1_b, wq, bq, wk, bk, wv, bv, wo, bo,
     ln2_g, ln2_b, w1, b1, w2, b2) = params
    inv = 1.0 / math.sqrt(DK)

    # (H, 4H + 2FF) = (32, 384)
    w_slab = jnp.concatenate(
        [wq * inv, wk, wv, wo, w1, w2.T], axis=1).astype(jnp.float32)

    def row(v, width=FF):
        v = jnp.reshape(v, (-1,)).astype(jnp.float32)
        return jnp.pad(v, (0, width - v.shape[0]))

    vec_slab = jnp.stack([
        row(ln1_g), row(ln1_b),
        row(jnp.concatenate([jnp.reshape(bq, (-1,)) * inv,
                             jnp.reshape(bk, (-1,)),
                             jnp.reshape(bv, (-1,))])),
        row(bo), row(ln2_g), row(ln2_b), row(b1), row(b2)], axis=0)   # (8, 128)
    return w_slab, vec_slab


# ------------------------ deterministic init ------------------------
def init_params(key):
    ks = jax.random.split(key, 8)
    scale = 0.02

    def lin(k, n_in, n_out):
        kw, kb = jax.random.split(k)
        w = scale * jax.random.normal(kw, (n_in, n_out), jnp.float32)
        b = scale * jax.random.normal(kb, (1, n_out), jnp.float32)
        return w, b

    wq, bq = lin(ks[0], H, H)
    wk, bk = lin(ks[1], H, H)
    wv, bv = lin(ks[2], H, H)
    wo, bo = lin(ks[3], H, H)
    w1, b1 = lin(ks[4], H, FF)
    w2, b2 = lin(ks[5], FF, H)
    ln1_g = jnp.ones((1, H), jnp.float32)
    ln1_b = jnp.zeros((1, H), jnp.float32)
    ln2_g = jnp.ones((1, H), jnp.float32)
    ln2_b = jnp.zeros((1, H), jnp.float32)
    return (ln1_g, ln1_b, wq, bq, wk, bk, wv, bv, wo, bo,
            ln2_g, ln2_b, w1, b1, w2, b2)


# ------------------------ pure-JAX reference ------------------------
def reference(x, params):
    (ln1_g, ln1_b, wq, bq, wk, bk, wv, bv, wo, bo,
     ln2_g, ln2_b, w1, b1, w2, b2) = params

    def ln(v, g, b):
        mean = jnp.mean(v, axis=-1, keepdims=True)
        var = jnp.sum((v - mean) ** 2, axis=-1, keepdims=True) / (H - 1)
        return g[0] * (v - mean) / (jnp.sqrt(var) + EPS) + b[0]

    h1 = ln(x, ln1_g, ln1_b)
    q = (h1 @ wq + bq[0]).reshape(B, S, NH, DK).transpose(0, 2, 1, 3)
    k = (h1 @ wk + bk[0]).reshape(B, S, NH, DK).transpose(0, 2, 1, 3)
    v = (h1 @ wv + bv[0]).reshape(B, S, NH, DK).transpose(0, 2, 1, 3)
    scores = jnp.einsum("bhqd,bhkd->bhqk", q, k) / math.sqrt(DK)
    p = jax.nn.softmax(scores, axis=-1)
    att = jnp.einsum("bhqk,bhkd->bhqd", p, v).transpose(0, 2, 1, 3).reshape(B, S, H)
    x1 = x + (att @ wo + bo[0])
    h2 = ln(x1, ln2_g, ln2_b)
    ffh = h2 @ w1 + b1[0]
    g = 0.5 * ffh * (1.0 + jnp.tanh(math.sqrt(2.0 / math.pi) * (ffh + 0.044715 * ffh ** 3)))
    return x1 + (g @ w2 + b2[0])


# ----------------------------- main -----------------------------
if __name__ == "__main__":
    key = jax.random.PRNGKey(0)
    kx, kp = jax.random.split(key)
    x = jax.random.normal(kx, (B, S, H), jnp.float32)
    params = init_params(kp)
    packed = pack_params(params)

    out = transformer_block(x, packed)
    out = jax.block_until_ready(out)

    ref = reference(x, params)
    assert out.shape == (B, S, H)
    err = jnp.max(jnp.abs(out - ref))
    assert jnp.allclose(out, ref, atol=1e-4, rtol=1e-4), f"max abs err {err}"
    print("KERNEL_OK")
</pallas_src>

<mosaic_0001>
module attributes {stable_mosaic.version = 11 : i64} {
  func.func @transformer_block_kernel(%arg0: i32, %arg1: memref<8x32xf32, #tpu.memory_space<vmem>>, %arg2: memref<32x384xf32, #tpu.memory_space<vmem>>, %arg3: memref<8x128xf32, #tpu.memory_space<vmem>>, %arg4: memref<8x32xf32, #tpu.memory_space<vmem>>) attributes {dimension_semantics = [#tpu.dimension_semantics<parallel>], iteration_bounds = array<i64: 2>, scalar_prefetch = 0 : i64, scratch_operands = 0 : i64, tpu.core_type = #tpu.core_type<tc>, window_params = [{transform_indices = @transform_0, window_bounds = array<i64: 8, 32>}, {pipeline_mode = #tpu.pipeline_mode<synchronous>, transform_indices = @transform_1, window_bounds = array<i64: 32, 384>}, {pipeline_mode = #tpu.pipeline_mode<synchronous>, transform_indices = @transform_2, window_bounds = array<i64: 8, 128>}, {transform_indices = @transform_3, window_bounds = array<i64: 8, 32>}]} {
    %c0 = arith.constant 0 : index
    %c0_0 = arith.constant 0 : index
    %0 = vector.load %arg1[%c0, %c0_0] : memref<8x32xf32, #tpu.memory_space<vmem>>, vector<8x32xf32>
    %c0_1 = arith.constant 0 : index
    %c0_2 = arith.constant 0 : index
    %1 = vector.load %arg2[%c0_1, %c0_2] : memref<32x384xf32, #tpu.memory_space<vmem>>, vector<32x128xf32>
    %c0_3 = arith.constant 0 : index
    %c96 = arith.constant 96 : index
    %2 = vector.load %arg2[%c0_3, %c96] : memref<32x384xf32, #tpu.memory_space<vmem>>, vector<32x32xf32>
    %c0_4 = arith.constant 0 : index
    %c128 = arith.constant 128 : index
    %3 = vector.load %arg2[%c0_4, %c128] : memref<32x384xf32, #tpu.memory_space<vmem>>, vector<32x128xf32>
    %c0_5 = arith.constant 0 : index
    %c256 = arith.constant 256 : index
    %4 = vector.load %arg2[%c0_5, %c256] : memref<32x384xf32, #tpu.memory_space<vmem>>, vector<32x128xf32>
    %c0_6 = arith.constant 0 : index
    %c0_7 = arith.constant 0 : index
    %5 = vector.load %arg3[%c0_6, %c0_7] : memref<8x128xf32, #tpu.memory_space<vmem>>, vector<1x32xf32>
    %c1 = arith.constant 1 : index
    %c0_8 = arith.constant 0 : index
    %6 = vector.load %arg3[%c1, %c0_8] : memref<8x128xf32, #tpu.memory_space<vmem>>, vector<1x32xf32>
    %c2 = arith.constant 2 : index
    %c0_9 = arith.constant 0 : index
    %7 = vector.load %arg3[%c2, %c0_9] : memref<8x128xf32, #tpu.memory_space<vmem>>, vector<1x128xf32>
    %c3 = arith.constant 3 : index
    %c0_10 = arith.constant 0 : index
    %8 = vector.load %arg3[%c3, %c0_10] : memref<8x128xf32, #tpu.memory_space<vmem>>, vector<1x32xf32>
    %c4 = arith.constant 4 : index
    %c0_11 = arith.constant 0 : index
    %9 = vector.load %arg3[%c4, %c0_11] : memref<8x128xf32, #tpu.memory_space<vmem>>, vector<1x32xf32>
    %c5 = arith.constant 5 : index
    %c0_12 = arith.constant 0 : index
    %10 = vector.load %arg3[%c5, %c0_12] : memref<8x128xf32, #tpu.memory_space<vmem>>, vector<1x32xf32>
    %c6 = arith.constant 6 : index
    %c0_13 = arith.constant 0 : index
    %11 = vector.load %arg3[%c6, %c0_13] : memref<8x128xf32, #tpu.memory_space<vmem>>, vector<1x128xf32>
    %c7 = arith.constant 7 : index
    %c0_14 = arith.constant 0 : index
    %12 = vector.load %arg3[%c7, %c0_14] : memref<8x128xf32, #tpu.memory_space<vmem>>, vector<1x32xf32>
    %cst = arith.constant dense<0.000000e+00> : vector<8xf32>
    %13 = vector.multi_reduction <add>, %0, %cst [1] : vector<8x32xf32> to vector<8xf32>
    %14 = vector.shape_cast %13 : vector<8xf32> to vector<8x1xf32>
    %cst_15 = arith.constant 3.200000e+01 : f32
    %15 = vector.broadcast %cst_15 : f32 to vector<8x1xf32>
    %16 = arith.divf %14, %15 : vector<8x1xf32>
    %17 = vector.broadcast %16 : vector<8x1xf32> to vector<8x32xf32>
    %18 = arith.subf %0, %17 : vector<8x32xf32>
    %19 = arith.mulf %18, %18 : vector<8x32xf32>
    %cst_16 = arith.constant dense<0.000000e+00> : vector<8xf32>
    %20 = vector.multi_reduction <add>, %19, %cst_16 [1] : vector<8x32xf32> to vector<8xf32>
    %21 = vector.shape_cast %20 : vector<8xf32> to vector<8x1xf32>
    %cst_17 = arith.constant 0.0322580636 : f32
    %22 = vector.broadcast %cst_17 : f32 to vector<8x1xf32>
    %23 = arith.mulf %21, %22 : vector<8x1xf32>
    %24 = math.sqrt %23 : vector<8x1xf32>
    %cst_18 = arith.constant 9.99999997E-7 : f32
    %25 = vector.broadcast %cst_18 : f32 to vector<8x1xf32>
    %26 = arith.addf %24, %25 : vector<8x1xf32>
    %27 = tpu.reciprocal %26 : vector<8x1xf32> -> vector<8x1xf32>
    %28 = vector.broadcast %16 : vector<8x1xf32> to vector<8x32xf32>
    %29 = arith.subf %0, %28 : vector<8x32xf32>
    %30 = vector.broadcast %5 : vector<1x32xf32> to vector<8x32xf32>
    %31 = arith.mulf %30, %29 : vector<8x32xf32>
    %32 = vector.broadcast %27 : vector<8x1xf32> to vector<8x32xf32>
    %33 = arith.mulf %31, %32 : vector<8x32xf32>
    %34 = vector.broadcast %6 : vector<1x32xf32> to vector<8x32xf32>
    %35 = arith.addf %33, %34 : vector<8x32xf32>
    %cst_19 = arith.constant dense<0.000000e+00> : vector<8x128xf32>
    %36 = tpu.matmul %35, %1, %cst_19 {dimension_numbers = #tpu.dot_dimension_numbers<[1], [0], [0], [1], [0, 0, 1, 1], [], []>} : vector<8x32xf32>, vector<32x128xf32>, vector<8x128xf32> -> vector<8x128xf32>
    %37 = vector.broadcast %7 : vector<1x128xf32> to vector<8x128xf32>
    %38 = arith.addf %36, %37 : vector<8x128xf32>
    %39 = vector.extract_strided_slice %38 {offsets = [0, 0], sizes = [8, 32], strides = [1, 1]} : vector<8x128xf32> to vector<8x32xf32>
    %40 = vector.extract_strided_slice %38 {offsets = [0, 32], sizes = [8, 32], strides = [1, 1]} : vector<8x128xf32> to vector<8x32xf32>
    %41 = vector.extract_strided_slice %38 {offsets = [0, 64], sizes = [8, 32], strides = [1, 1]} : vector<8x128xf32> to vector<8x32xf32>
    %cst_20 = arith.constant 0.000000e+00 : f32
    %42 = vector.broadcast %cst_20 : f32 to vector<8x32xf32>
    %43 = vector.extract_strided_slice %39 {offsets = [0, 0], sizes = [8, 8], strides = [1, 1]} : vector<8x32xf32> to vector<8x8xf32>
    %44 = vector.extract_strided_slice %40 {offsets = [0, 0], sizes = [8, 8], strides = [1, 1]} : vector<8x32xf32> to vector<8x8xf32>
    %45 = vector.extract_strided_slice %41 {offsets = [0, 0], sizes = [8, 8], strides = [1, 1]} : vector<8x32xf32> to vector<8x8xf32>
    %cst_21 = arith.constant dense<0.000000e+00> : vector<8x8xf32>
    %46 = tpu.matmul %43, %44, %cst_21 {dimension_numbers = #tpu.dot_dimension_numbers<[1], [1], [0], [0], [0, 0, 1, 0], [], []>} : vector<8x8xf32>, vector<8x8xf32>, vector<8x8xf32> -> vector<8x8xf32>
    %cst_22 = arith.constant dense<0xFF800000> : vector<8xf32>
    %47 = vector.multi_reduction <maximumf>, %46, %cst_22 [1] : vector<8x8xf32> to vector<8xf32>
    %48 = vector.shape_cast %47 : vector<8xf32> to vector<8x1xf32>
    %49 = vector.broadcast %48 : vector<8x1xf32> to vector<8x8xf32>
    %50 = arith.subf %46, %49 : vector<8x8xf32>
    %51 = math.exp %50 : vector<8x8xf32>
    %cst_23 = arith.constant dense<0.000000e+00> : vector<8xf32>
    %52 = vector.multi_reduction <add>, %51, %cst_23 [1] : vector<8x8xf32> to vector<8xf32>
    %53 = vector.shape_cast %52 : vector<8xf32> to vector<8x1xf32>
    %54 = tpu.reciprocal %53 : vector<8x1xf32> -> vector<8x1xf32>
    %55 = vector.broadcast %54 : vector<8x1xf32> to vector<8x8xf32>
    %56 = arith.mulf %51, %55 : vector<8x8xf32>
    %cst_24 = arith.constant dense<0.000000e+00> : vector<8x8xf32>
    %57 = tpu.matmul %56, %45, %cst_24 {dimension_numbers = #tpu.dot_dimension_numbers<[1], [0], [0], [1], [0, 0, 1, 1], [], []>} : vector<8x8xf32>, vector<8x8xf32>, vector<8x8xf32> -> vector<8x8xf32>
    %58 = vector.extract_strided_slice %2 {offsets = [0, 0], sizes = [8, 32], strides = [1, 1]} : vector<32x32xf32> to vector<8x32xf32>
    %cst_25 = arith.constant dense<0.000000e+00> : vector<8x32xf32>
    %59 = tpu.matmul %57, %58, %cst_25 {dimension_numbers = #tpu.dot_dimension_numbers<[1], [0], [0], [1], [0, 0, 1, 1], [], []>} : vector<8x8xf32>, vector<8x32xf32>, vector<8x32xf32> -> vector<8x32xf32>
    %60 = arith.addf %42, %59 : vector<8x32xf32>
    %61 = vector.extract_strided_slice %39 {offsets = [0, 8], sizes = [8, 8], strides = [1, 1]} : vector<8x32xf32> to vector<8x8xf32>
    %62 = vector.extract_strided_slice %40 {offsets = [0, 8], sizes = [8, 8], strides = [1, 1]} : vector<8x32xf32> to vector<8x8xf32>
    %63 = vector.extract_strided_slice %41 {offsets = [0, 8], sizes = [8, 8], strides = [1, 1]} : vector<8x32xf32> to vector<8x8xf32>
    %cst_26 = arith.constant dense<0.000000e+00> : vector<8x8xf32>
    %64 = tpu.matmul %61, %62, %cst_26 {dimension_numbers = #tpu.dot_dimension_numbers<[1], [1], [0], [0], [0, 0, 1, 0], [], []>} : vector<8x8xf32>, vector<8x8xf32>, vector<8x8xf32> -> vector<8x8xf32>
    %cst_27 = arith.constant dense<0xFF800000> : vector<8xf32>
    %65 = vector.multi_reduction <maximumf>, %64, %cst_27 [1] : vector<8x8xf32> to vector<8xf32>
    %66 = vector.shape_cast %65 : vector<8xf32> to vector<8x1xf32>
    %67 = vector.broadcast %66 : vector<8x1xf32> to vector<8x8xf32>
    %68 = arith.subf %64, %67 : vector<8x8xf32>
    %69 = math.exp %68 : vector<8x8xf32>
    %cst_28 = arith.constant dense<0.000000e+00> : vector<8xf32>
    %70 = vector.multi_reduction <add>, %69, %cst_28 [1] : vector<8x8xf32> to vector<8xf32>
    %71 = vector.shape_cast %70 : vector<8xf32> to vector<8x1xf32>
    %72 = tpu.reciprocal %71 : vector<8x1xf32> -> vector<8x1xf32>
    %73 = vector.broadcast %72 : vector<8x1xf32> to vector<8x8xf32>
    %74 = arith.mulf %69, %73 : vector<8x8xf32>
    %cst_29 = arith.constant dense<0.000000e+00> : vector<8x8xf32>
    %75 = tpu.matmul %74, %63, %cst_29 {dimension_numbers = #tpu.dot_dimension_numbers<[1], [0], [0], [1], [0, 0, 1, 1], [], []>} : vector<8x8xf32>, vector<8x8xf32>, vector<8x8xf32> -> vector<8x8xf32>
    %76 = vector.extract_strided_slice %2 {offsets = [8, 0], sizes = [8, 32], strides = [1, 1]} : vector<32x32xf32> to vector<8x32xf32>
    %cst_30 = arith.constant dense<0.000000e+00> : vector<8x32xf32>
    %77 = tpu.matmul %75, %76, %cst_30 {dimension_numbers = #tpu.dot_dimension_numbers<[1], [0], [0], [1], [0, 0, 1, 1], [], []>} : vector<8x8xf32>, vector<8x32xf32>, vector<8x32xf32> -> vector<8x32xf32>
    %78 = arith.addf %60, %77 : vector<8x32xf32>
    %79 = vector.extract_strided_slice %39 {offsets = [0, 16], sizes = [8, 8], strides = [1, 1]} : vector<8x32xf32> to vector<8x8xf32>
    %80 = vector.extract_strided_slice %40 {offsets = [0, 16], sizes = [8, 8], strides = [1, 1]} : vector<8x32xf32> to vector<8x8xf32>
    %81 = vector.extract_strided_slice %41 {offsets = [0, 16], sizes = [8, 8], strides = [1, 1]} : vector<8x32xf32> to vector<8x8xf32>
    %cst_31 = arith.constant dense<0.000000e+00> : vector<8x8xf32>
    %82 = tpu.matmul %79, %80, %cst_31 {dimension_numbers = #tpu.dot_dimension_numbers<[1], [1], [0], [0], [0, 0, 1, 0], [], []>} : vector<8x8xf32>, vector<8x8xf32>, vector<8x8xf32> -> vector<8x8xf32>
    %cst_32 = arith.constant dense<0xFF800000> : vector<8xf32>
    %83 = vector.multi_reduction <maximumf>, %82, %cst_32 [1] : vector<8x8xf32> to vector<8xf32>
    %84 = vector.shape_cast %83 : vector<8xf32> to vector<8x1xf32>
    %85 = vector.broadcast %84 : vector<8x1xf32> to vector<8x8xf32>
    %86 = arith.subf %82, %85 : vector<8x8xf32>
    %87 = math.exp %86 : vector<8x8xf32>
    %cst_33 = arith.constant dense<0.000000e+00> : vector<8xf32>
    %88 = vector.multi_reduction <add>, %87, %cst_33 [1] : vector<8x8xf32> to vector<8xf32>
    %89 = vector.shape_cast %88 : vector<8xf32> to vector<8x1xf32>
    %90 = tpu.reciprocal %89 : vector<8x1xf32> -> vector<8x1xf32>
    %91 = vector.broadcast %90 : vector<8x1xf32> to vector<8x8xf32>
    %92 = arith.mulf %87, %91 : vector<8x8xf32>
    %cst_34 = arith.constant dense<0.000000e+00> : vector<8x8xf32>
    %93 = tpu.matmul %92, %81, %cst_34 {dimension_numbers = #tpu.dot_dimension_numbers<[1], [0], [0], [1], [0, 0, 1, 1], [], []>} : vector<8x8xf32>, vector<8x8xf32>, vector<8x8xf32> -> vector<8x8xf32>
    %94 = vector.extract_strided_slice %2 {offsets = [16, 0], sizes = [8, 32], strides = [1, 1]} : vector<32x32xf32> to vector<8x32xf32>
    %cst_35 = arith.constant dense<0.000000e+00> : vector<8x32xf32>
    %95 = tpu.matmul %93, %94, %cst_35 {dimension_numbers = #tpu.dot_dimension_numbers<[1], [0], [0], [1], [0, 0, 1, 1], [], []>} : vector<8x8xf32>, vector<8x32xf32>, vector<8x32xf32> -> vector<8x32xf32>
    %96 = arith.addf %78, %95 : vector<8x32xf32>
    %97 = vector.extract_strided_slice %39 {offsets = [0, 24], sizes = [8, 8], strides = [1, 1]} : vector<8x32xf32> to vector<8x8xf32>
    %98 = vector.extract_strided_slice %40 {offsets = [0, 24], sizes = [8, 8], strides = [1, 1]} : vector<8x32xf32> to vector<8x8xf32>
    %99 = vector.extract_strided_slice %41 {offsets = [0, 24], sizes = [8, 8], strides = [1, 1]} : vector<8x32xf32> to vector<8x8xf32>
    %cst_36 = arith.constant dense<0.000000e+00> : vector<8x8xf32>
    %100 = tpu.matmul %97, %98, %cst_36 {dimension_numbers = #tpu.dot_dimension_numbers<[1], [1], [0], [0], [0, 0, 1, 0], [], []>} : vector<8x8xf32>, vector<8x8xf32>, vector<8x8xf32> -> vector<8x8xf32>
    %cst_37 = arith.constant dense<0xFF800000> : vector<8xf32>
    %101 = vector.multi_reduction <maximumf>, %100, %cst_37 [1] : vector<8x8xf32> to vector<8xf32>
    %102 = vector.shape_cast %101 : vector<8xf32> to vector<8x1xf32>
    %103 = vector.broadcast %102 : vector<8x1xf32> to vector<8x8xf32>
    %104 = arith.subf %100, %103 : vector<8x8xf32>
    %105 = math.exp %104 : vector<8x8xf32>
    %cst_38 = arith.constant dense<0.000000e+00> : vector<8xf32>
    %106 = vector.multi_reduction <add>, %105, %cst_38 [1] : vector<8x8xf32> to vector<8xf32>
    %107 = vector.shape_cast %106 : vector<8xf32> to vector<8x1xf32>
    %108 = tpu.reciprocal %107 : vector<8x1xf32> -> vector<8x1xf32>
    %109 = vector.broadcast %108 : vector<8x1xf32> to vector<8x8xf32>
    %110 = arith.mulf %105, %109 : vector<8x8xf32>
    %cst_39 = arith.constant dense<0.000000e+00> : vector<8x8xf32>
    %111 = tpu.matmul %110, %99, %cst_39 {dimension_numbers = #tpu.dot_dimension_numbers<[1], [0], [0], [1], [0, 0, 1, 1], [], []>} : vector<8x8xf32>, vector<8x8xf32>, vector<8x8xf32> -> vector<8x8xf32>
    %112 = vector.extract_strided_slice %2 {offsets = [24, 0], sizes = [8, 32], strides = [1, 1]} : vector<32x32xf32> to vector<8x32xf32>
    %cst_40 = arith.constant dense<0.000000e+00> : vector<8x32xf32>
    %113 = tpu.matmul %111, %112, %cst_40 {dimension_numbers = #tpu.dot_dimension_numbers<[1], [0], [0], [1], [0, 0, 1, 1], [], []>} : vector<8x8xf32>, vector<8x32xf32>, vector<8x32xf32> -> vector<8x32xf32>
    %114 = arith.addf %96, %113 : vector<8x32xf32>
    %115 = arith.addf %0, %114 : vector<8x32xf32>
    %116 = vector.broadcast %8 : vector<1x32xf32> to vector<8x32xf32>
    %117 = arith.addf %115, %116 : vector<8x32xf32>
    %cst_41 = arith.constant dense<0.000000e+00> : vector<8xf32>
    %118 = vector.multi_reduction <add>, %117, %cst_41 [1] : vector<8x32xf32> to vector<8xf32>
    %119 = vector.shape_cast %118 : vector<8xf32> to vector<8x1xf32>
    %cst_42 = arith.constant 3.200000e+01 : f32
    %120 = vector.broadcast %cst_42 : f32 to vector<8x1xf32>
    %121 = arith.divf %119, %120 : vector<8x1xf32>
    %122 = vector.broadcast %121 : vector<8x1xf32> to vector<8x32xf32>
    %123 = arith.subf %117, %122 : vector<8x32xf32>
    %124 = arith.mulf %123, %123 : vector<8x32xf32>
    %cst_43 = arith.constant dense<0.000000e+00> : vector<8xf32>
    %125 = vector.multi_reduction <add>, %124, %cst_43 [1] : vector<8x32xf32> to vector<8xf32>
    %126 = vector.shape_cast %125 : vector<8xf32> to vector<8x1xf32>
    %cst_44 = arith.constant 0.0322580636 : f32
    %127 = vector.broadcast %cst_44 : f32 to vector<8x1xf32>
    %128 = arith.mulf %126, %127 : vector<8x1xf32>
    %129 = math.sqrt %128 : vector<8x1xf32>
    %cst_45 = arith.constant 9.99999997E-7 : f32
    %130 = vector.broadcast %cst_45 : f32 to vector<8x1xf32>
    %131 = arith.addf %129, %130 : vector<8x1xf32>
    %132 = tpu.reciprocal %131 : vector<8x1xf32> -> vector<8x1xf32>
    %133 = vector.broadcast %121 : vector<8x1xf32> to vector<8x32xf32>
    %134 = arith.subf %117, %133 : vector<8x32xf32>
    %135 = vector.broadcast %9 : vector<1x32xf32> to vector<8x32xf32>
    %136 = arith.mulf %135, %134 : vector<8x32xf32>
    %137 = vector.broadcast %132 : vector<8x1xf32> to vector<8x32xf32>
    %138 = arith.mulf %136, %137 : vector<8x32xf32>
    %139 = vector.broadcast %10 : vector<1x32xf32> to vector<8x32xf32>
    %140 = arith.addf %138, %139 : vector<8x32xf32>
    %cst_46 = arith.constant dense<0.000000e+00> : vector<8x128xf32>
    %141 = tpu.matmul %140, %3, %cst_46 {dimension_numbers = #tpu.dot_dimension_numbers<[1], [0], [0], [1], [0, 0, 1, 1], [], []>} : vector<8x32xf32>, vector<32x128xf32>, vector<8x128xf32> -> vector<8x128xf32>
    %142 = vector.broadcast %11 : vector<1x128xf32> to vector<8x128xf32>
    %143 = arith.addf %141, %142 : vector<8x128xf32>
    %cst_47 = arith.constant 5.000000e-01 : f32
    %144 = vector.broadcast %cst_47 : f32 to vector<8x128xf32>
    %145 = arith.mulf %144, %143 : vector<8x128xf32>
    %cst_48 = arith.constant 4.471500e-02 : f32
    %146 = vector.broadcast %cst_48 : f32 to vector<8x128xf32>
    %147 = arith.mulf %146, %143 : vector<8x128xf32>
    %148 = arith.mulf %147, %143 : vector<8x128xf32>
    %149 = arith.mulf %148, %143 : vector<8x128xf32>
    %150 = arith.addf %143, %149 : vector<8x128xf32>
    %cst_49 = arith.constant 0.797884583 : f32
    %151 = vector.broadcast %cst_49 : f32 to vector<8x128xf32>
    %152 = arith.mulf %151, %150 : vector<8x128xf32>
    %153 = math.tanh %152 : vector<8x128xf32>
    %cst_50 = arith.constant 1.000000e+00 : f32
    %154 = vector.broadcast %cst_50 : f32 to vector<8x128xf32>
    %155 = arith.addf %154, %153 : vector<8x128xf32>
    %156 = arith.mulf %145, %155 : vector<8x128xf32>
    %cst_51 = arith.constant dense<0.000000e+00> : vector<8x32xf32>
    %157 = tpu.matmul %156, %4, %cst_51 {dimension_numbers = #tpu.dot_dimension_numbers<[1], [1], [0], [0], [0, 0, 1, 0], [], []>} : vector<8x128xf32>, vector<32x128xf32>, vector<8x32xf32> -> vector<8x32xf32>
    %158 = vector.broadcast %12 : vector<1x32xf32> to vector<8x32xf32>
    %159 = arith.addf %157, %158 : vector<8x32xf32>
    %160 = arith.addf %117, %159 : vector<8x32xf32>
    %c0_52 = arith.constant 0 : index
    %c0_53 = arith.constant 0 : index
    %161 = vector.load %arg4[%c0_52, %c0_53] : memref<8x32xf32, #tpu.memory_space<vmem>>, vector<8x32xf32>
    tpu.vector_store %arg4[%c0_52, %c0_53], %160 {strides = array<i32>} : memref<8x32xf32, #tpu.memory_space<vmem>>, vector<8x32xf32>,
    return
  }
  func.func @transform_0(%arg0: i32) -> (i32, i32) {
    %c0_i32 = arith.constant 0 : i32
    %c0_i32_0 = arith.constant 0 : i32
    return %arg0, %c0_i32 : i32, i32
  }
  func.func @transform_1(%arg0: i32) -> (i32, i32) {
    %c0_i32 = arith.constant 0 : i32
    %c0_i32_0 = arith.constant 0 : i32
    %c0_i32_1 = arith.constant 0 : i32
    return %c0_i32, %c0_i32_0 : i32, i32
  }
  func.func @transform_2(%arg0: i32) -> (i32, i32) {
    %c0_i32 = arith.constant 0 : i32
    %c0_i32_0 = arith.constant 0 : i32
    %c0_i32_1 = arith.constant 0 : i32
    return %c0_i32, %c0_i32_0 : i32, i32
  }
  func.func @transform_3(%arg0: i32) -> (i32, i32) {
    %c0_i32 = arith.constant 0 : i32
    %c0_i32_0 = arith.constant 0 : i32
    return %arg0, %c0_i32 : i32, i32
  }
}

</mosaic_0001>

<bundles_post_ra>
// kernel: transformer_block.1
= control target key start
LH: loop header
LB: loop body
LE: loop exit
PB: predicated region body
PF: predicated region fallthrough
CT: control target
= control target key end

     0   :  { %8 = vsyncpa [#allocation3], 0  ;;  %s1524_s0 = inlined_call_operand.hbm [shape: f32[16,32], index: 0, kind: input, shape index: {}]   ;;  %s1525_s1 = inlined_call_operand.hbm [shape: f32[32,384], index: 1, kind: input, shape index: {}]   ;;  %s1526_s2 = inlined_call_operand.hbm [shape: f32[8,128], index: 2, kind: input, shape index: {}]   ;;  %s1527_s3 = inlined_call_operand.hbm [shape: f32[16,32], index: 3, kind: output, shape index: {}]  }
   0x1   :  { %10 = vsyncpa [#allocation3 + $0x1], 0 }
   0x2   :  { %11 = vsyncpa [#allocation6], 0 }
   0x3   :  { %12 = vsyncpa [#allocation4], 0 }
   0x4   :  { %14 = vsyncpa [#allocation4 + $0x1], 0  ;;  %s1293_s12 = smov 0   ;;  %s1295_s13 = smov 0  }
   0x5   :  { %s1297_s14 = smov 0   ;;  %s1299_s15 = smov 0  }
   0x6 LB: > { %s130_s18 = sshll.u32 %s1525_s1, 4  ;;  %s1317_s19 = sadd.s32 4294967295, %s1254_s15   ;;  %s1254_s15 = sphi %s1299_s15, %s1538_s15   ;;  %s1250_s14 = sphi %s1297_s14, %s1537_s14   ;;  %s1246_s13 = sphi %s1295_s13, %s1536_s13   ;;  %s1242_s12 = sphi %s1293_s12, %s1535_s12   ;;  %s131_s18 = int_to_ptr.hbm [resolvable:$true] %s130_s18 }
   0x7   : > { %p943_p0 = scmp.ge.s32.totalorder %s1254_s15, 1  ;;  %p41_p1 = scmp.eq.s32.totalorder %s1317_s19, 0 }
   0x8   : > { %p119_p2 = scmp.lt.s32.totalorder %s1254_s15, 3  ;;  %s1256_s21 = smov [#allocation5]  }
   0x9   : > { %s132_s22 = sshll.u32 %s1256_s21, 4  ;;  %s145_s25 = sshll.u32 %s1526_s2, 4  ;;  %s133_s22 = int_to_ptr.vmem [resolvable:$true] %s132_s22  ;;  %s146_s25 = int_to_ptr.hbm [resolvable:$true] %s145_s25 }
   0xa   : > { %p1322_p3 = pnand %p943_p0, %p119_p2  ;;  %s1257_s26 = smov [#allocation7]  }
   0xb   : > { %s147_s27 = sshll.u32 %s1257_s26, 4  ;;  %s1258_s28 = smov 384   ;;  %s148_s27 = int_to_ptr.vmem [resolvable:$true] %s147_s27 }
   0xc   : > { %p988_p4 = pneg %p1322_p3  ;;  %s1259_s29 = smov 24  }
   0xd   : > { %s942_s30 = sadd.s32 4294967294, %s1254_s15   ;;  %s1336_s4 = sadd.s32 1, %s1254_s15  }
   0xe   : > { %p989_p6 = pnand %p988_p4, %p41_p1  ;;  %s24_s5 = ssub.s32 %s1254_s15, %s1336_s4 }
   0xf   : > { %s27_s6 = sadd.s32 1, %s1250_s14  ;;  %p25_p7 = scmp.eq.s32.totalorder %s24_s5, 0 }
  0x10   : > { %991 = dma.hbm_to_vmem [thread:$0]  (!%p989_p6), %s131_s18, 1536, %s133_s22, [#allocation6], %s1258_s28, %s1258_s28, %s1259_s29  }
  0x11   : > { %994 = dma.hbm_to_vmem [thread:$0]  (!%p989_p6), %s146_s25, 128, %s148_s27, [#allocation6]  }
  0x12   : > { %p34_p8 = scmp.ne.s32.totalorder %s1250_s14, %s1246_s13  ;;  %p35_p9 = scmp.eq.s32.totalorder %s1254_s15, 0 }
  0x13   : > { %p40_p10 = scmp.ne.s32.totalorder %s1246_s13, %s1242_s12  ;;  %p106_p13 = scmp.eq.s32.totalorder %s1317_s19, 1 }
  0x14   : > { %s1347_s7 = scalar_select %p25_p7, %s1250_s14, %s27_s6  }
  0x15   : > { %p1349_p11 = por %p35_p9, %p34_p8  ;;  %p1355_p12 = por %p41_p1, %p40_p10 }
  0x16   : > { %p112_p0 = scmp.eq.s32.totalorder %s942_s30, 1  ;;  %p1005_p2 = scmp.lt.s32.totalorder %s1254_s15, 2 }
  0x17   : > { %s158_s10 = sand.u32 1, %s1250_s14   ;;  %p1362_p4 = por %p106_p13, %p34_p8 }
  0x18   : > { %p1366_p6 = por %p112_p0, %p40_p10  ;;  %s947_s17 = sshll.u32 %s158_s10, 3 }
  0x19   : > { %s948_s18 = sshll.u32 %s1254_s15, 3  ;;  %s162_s24 = scalar_lea.vmem [#allocation2], %s947_s17 }
  0x1a   : > { %s166_s23 = scalar_lea.hbm %s1524_s0, %s948_s18  ;;  %s170_s25 = sshll.u32 %s162_s24, 4  ;;  %s171_s25 = int_to_ptr.vmem [resolvable:$true] %s170_s25 }
  0x1b   : > { %s168_s26 = sshll.u32 %s166_s23, 4  ;;  %p1376_p7 = pnand %p1005_p2, %p1349_p11  ;;  %s169_s26 = int_to_ptr.hbm [resolvable:$true] %s168_s26 }
  0x1c   : > { %s159_s28 = scalar_lea.sflag [#allocation3], %s158_s10  ;;  %s1154_s29 = sshra.s32 %s169_s26, 4  ;;  %s1155_s29 = int_to_ptr.hbm [resolvable:$true] %s1154_s29 }
  0x1d   : > { %s1156_s30 = scalar_lea.hbm %s1155_s29, 8  ;;  %p1158_p9 = pneg %p1376_p7 }
  0x1e   : > { %p1157_p8 = scmp.ne.s32.totalorder %s1155_s29, %s1156_s30  ;;  %s1161_s17 = scalar_lea.hbm %s1524_s0, 16 }
  0x1f   : > { %p1162_p11 = scmp.lt.s32.totalorder %s1155_s29, %s1524_s0  ;;  %p1163_p0 = scmp.lt.s32.totalorder %s1161_s17, %s1156_s30 }
  0x20   : > { %p1159_p10 = pnand %p1158_p9, %p1157_p8 }
  0x21   : > { %p1164_p2 = por %p1163_p0, %p1162_p11 }
  0x22   : > { %p1160_p13 = pneg %p1159_p10 }
  0x24   : > { %p1165_p5 = pnand %p1164_p2, %p1160_p13 }
  0x26   : > { %1168 = shalt.err (!%p1165_p5)
}
  0x27   : > { %998 = dma.hbm_to_vmem [thread:$0]  (!%p1376_p7), %s169_s26, 128, %s171_s25, %s159_s28  }
  0x28   : > { %179 = sbr.rel (%p1322_p3) target bundleno = 2348 (0x92c), region = 32  ;;  %s1393_s10 = sand.u32 (!%p1322_p3), 1, %s1246_s13  }
  0x29   : > { %s950_s21 = sshll.u32 (!%p1322_p3), %s1393_s10, 3  ;;  %s182_s22 = scalar_lea.sflag (!%p1322_p3), [#allocation3], %s1393_s10 }
  0x2a   : > { %s185_s23 = scalar_lea.vmem (!%p1322_p3), [#allocation2], %s950_s21 }
  0x2d   : > { %1229 = dma.done.wait (%p1355_p12), %s182_s22, 128  }
  0x2e   : > { %1231 = vsyncadd (%p1355_p12), %s182_s22, 4294967168 }
  0x2f   : > { %1233 = dma.done.wait (%p41_p1), [#allocation6], 1664  }
  0x30   : > { %1235 = vsyncadd (%p41_p1), [#allocation6], 4294965632  ;;  %vm240_vm0 = vcmask 261120   ;;  %v1407_v0 = vld [vmem:[%s185_s23] sm:$0xff]  ;;  %v1260_v2 = vmov 32.0   ;;  %v1416_v14 = vld [vmem:[#allocation5 + $0x48] sm:$0xff] }
  0x31   : > { %v241_v1 = vsel %vm240_vm0, %v1407_v0, 0.0  ;;  %1066 = vrcp.f32 %v1260_v2  ;;  %v1418_v15 = vld [vmem:[#allocation5 + $0x30] sm:$0xff]  ;;  %306 = vmatpush.msra.mxu0 %v1416_v14  ;;  %v220_v16 = vld [vmem:[#allocation5] sm:$0xff]  ;;  %v1421_v17 = vld [vmem:[#allocation5 + $0x18] sm:$0xff]  ;;  %s1261_s20 = smov 32   ;;  %s1262_s9 = smov 120  }
  0x32   : > { %242 = vadd.xlane.f32.xlu0 %v241_v1  ;;  %v1058_v35 = vld [vmem:[#allocation7] ss:$0 sm:$0xff]  ;;  %v1059_v42 = vld [vmem:[#allocation7 + $0x1] ss:$0 sm:$0xff]  ;;  %v1060_v47 = vld [vmem:[#allocation7 + $0x2] ss:$0 sm:$0xff] }
  0x33   : > { %307 = vmatpush.msra.mxu0 %v1418_v15  ;;  %s1263_s24 = smov 96   ;;  %s1264_s25 = smov 104   ;;  %vm317_vm8 = vcmask 64512  }
  0x34   : > { %s1265_s26 = smov 112   ;;  %s1266_s27 = smov 64  }
  0x35   : > { %308 = vmatpush.msra.mxu0 %v1421_v17  ;;  %s1267_s28 = smov 88   ;;  %s1268_s29 = smov 72  }
  0x36   : > { %s1269_s30 = smov 80   ;;  %s1270_s5 = smov 56  }
  0x37   : > { %v1067_v3 = vpop.eup %1066  ;;  %309 = vmatpush.msra.mxu0 %v220_v16  ;;  %s1271_s6 = smov 40   ;;  %s1272_s17 = smov 48  }
  0x38   : > { %v245_v4 = vmul.f32 32.0, %v1067_v3  ;;  %vm249_vm1 = vweird.f32 %v1067_v3  ;;  %s973_s18 = sshll.u32 %s1317_s19, 3 }
  0x39   : > { %s848_s23 = scalar_lea.hbm %s1527_s3, %s973_s18 }
  0x3a   : > { %v246_v5 = vsub.f32 1.0, %v245_v4 }
  0x3c   : > { %v247_v6 = vmul.f32 %v1067_v3, %v246_v5 }
  0x3e   : > { %v248_v7 = vadd.f32 %v1067_v3, %v247_v6 }
  0x40   : > { %v1411_v8 = vsel %vm249_vm1, %v1067_v3, %v248_v7 }
  0xa5   : > { %v243_v9 = vpop.xlane.xlu0 %242 }
  0xa6   : > { %v251_v10 = vmul.f32 %v1411_v8, %v243_v9 }
  0xa8   : > { %v252_v11 = vsub.f32 %v1407_v0, %v251_v10 }
  0xaa   : > { %v253_v12 = vmul.f32 %v252_v11, %v252_v11  ;;  %v286_v40 = vmul.f32 %v1058_v35, %v252_v11 }
  0xac   : > { %v254_v13 = vsel %vm240_vm0, %v253_v12, 0.0 }
  0xad   : > { %255 = vadd.xlane.f32.xlu0 %v254_v13 }
  0xc1   : > { %498 = vrot.lane.b32.xlu0 %v220_v16, %s1261_s20 }
 0x120   : > { %v256_v18 = vpop.xlane.xlu0 %255 }
 0x121   : > { %v257_v19 = vmul.f32 0.032258064, %v256_v18 }
 0x123   : > { %1068 = vrsqrt.f32 %v257_v19  ;;  %vm265_vm2 = vcmp.eq.f32.partialorder %v257_v19, inf  ;;  %v268_v27 = vand.u32 2147483648, %v257_v19  ;;  %vm267_vm3 = vcmp.eq.f32.partialorder %v257_v19, 0.0 }
 0x129   : > { %v1069_v20 = vpop.eup %1068 }
 0x12a   : > { %v259_v21 = vmul.f32 %v1069_v20, %v257_v19 }
 0x12c   : > { %v260_v22 = vmul.f32 %v1069_v20, %v259_v21 }
 0x12e   : > { %v261_v23 = vmul.f32 0.5, %v260_v22 }
 0x130   : > { %v262_v24 = vsub.f32 1.5, %v261_v23 }
 0x132   : > { %v263_v25 = vmul.f32 %v1069_v20, %v262_v24 }
 0x133   : > { %v499_v46 = vpop.permute.xlu0 %498 }
 0x134   : > { %v264_v26 = vmul.f32 %v263_v25, %v257_v19  ;;  %519 = vmatpush.msra.mxu3 %v499_v46 }
 0x136   : > { %v266_v28 = vsel %vm265_vm2, %v257_v19, %v264_v26 }
 0x137   : > { %v269_v29 = vsel %vm267_vm3, %v268_v27, %v266_v28 }
 0x138   : > { %v270_v30 = vadd.f32 1e-06, %v269_v29 }
 0x13a   : > { %1070 = vrcp.f32 %v270_v30  ;;  %v282_v34 = vand.u32 2147483648, %v270_v30  ;;  %v280_v37 = vand.u32 2147483647, %v270_v30  ;;  %vm276_vm5 = vweird.f32 %v270_v30 }
 0x13c   : > { %v283_v39 = vor.u32 1.1754944e-38, %v282_v34  ;;  %vm281_vm7 = vcmp.eq.f32.partialorder %v280_v37, 8.507059e+37 }
 0x140   : > { %v1071_v31 = vpop.eup %1070 }
 0x141   : > { %v272_v32 = vmul.f32 %v1071_v31, %v270_v30  ;;  %vm277_vm4 = vweird.f32 %v1071_v31 }
 0x142   : > { %vm278_vm6 = vmor %vm276_vm5, %vm277_vm4 }
 0x143   : > { %v273_v33 = vsub.f32 1.0, %v272_v32 }
 0x145   : > { %v274_v36 = vmul.f32 %v1071_v31, %v273_v33 }
 0x147   : > { %v275_v38 = vadd.f32 %v1071_v31, %v274_v36 }
 0x149   : > { %v279_v41 = vsel %vm278_vm6, %v1071_v31, %v275_v38 }
 0x14a   : > { %v284_v43 = vsel %vm281_vm7, %v283_v39, %v279_v41 }
 0x14b   : > { %v287_v44 = vmul.f32 %v286_v40, %v284_v43 }
 0x14d   : > { %v289_v45 = vadd.f32 %v1059_v42, %v287_v44 }
 0x14f   : > { %954 = vmatmul.msk.f32.vlgmr.msra.gmra.mxu0 %vm240_vm0, %v289_v45 }
 0x1cc   : > { %v311_v48 = vpop.f32.mrf.mxu0 }
 0x1cd   : > { %v1427_v49 = vadd.f32 %v1060_v47, %v311_v48 }
 0x1cf   : > { %392 = vrot.lane.b32.xlu0 %v1427_v49, %s1262_s9  ;;  %315 = vrot.lane.b32.xlu1 %v1427_v49, %s1263_s24  ;;  %s852_s24 = sshll.u32 %s848_s23, 4  ;;  %s853_s24 = int_to_ptr.hbm [resolvable:$true] %s852_s24 }
 0x1d0   : > { %s1198_s19 = sshra.s32 %s853_s24, 4  ;;  %s1199_s19 = int_to_ptr.hbm [resolvable:$true] %s1198_s19 }
 0x1d1   : > { %p1205_p12 = scmp.lt.s32.totalorder %s1199_s19, %s1527_s3 }
 0x1d7   : > { %630 = vrot.lane.b32.xlu0 %v1427_v49, %s1264_s25  ;;  %s838_s25 = scalar_lea.sflag [#allocation4], %s1393_s10 }
 0x241   : > { %v316_v50 = vpop.permute.xlu1 %315  ;;  %v393_v10 = vpop.permute.xlu0 %392 }
 0x242   : > { %955 = vmatpush.xpose.msk.msra.mxu1 %vm317_vm8, %v316_v50 }
 0x245   : > { %956 = vmatmul.msk.f32.vlgmr.msra.gmra.mxu1 %vm317_vm8, %v1427_v49 }
 0x249   : > { %v631_v20 = vpop.permute.xlu0 %630 }
 0x2c2   : > { %v339_v51 = vpop.f32.mrf.mxu1 }
 0x2c3   : > { %v342_v52 = vsel %vm317_vm8, %v339_v51, -inf }
 0x2c4   : > { %343 = vmax.xlane.f32.xlu1 %v342_v52 }
 0x2dd   : > { %524 = vrot.lane.b32.xlu1 %v1427_v49, %s1265_s26  ;;  %s1200_s26 = scalar_lea.hbm %s1199_s19, 8 }
 0x2de   : > { %p1201_p1 = scmp.ne.s32.totalorder %s1199_s19, %s1200_s26 }
 0x2e0   : > { %p1202_p3 = pnand %p1201_p1, %p1362_p4 }
 0x2e2   : > { %p1203_p5 = pneg %p1202_p3 }
 0x337   : > { %v344_v53 = vpop.xlane.xlu1 %343 }
 0x338   : > { %v345_v54 = vsub.f32 %v339_v51, %v344_v53 }
 0x33a   : > { %v346_v55 = vmul.f32 1.442695, %v345_v54 }
 0x33c   : > { %1072 = vpow2.f32 %v346_v55 }
 0x342   : > { %v1073_v56 = vpop.eup %1072 }
 0x343   : > { %v348_v57 = vsel %vm317_vm8, %v1073_v56, 0.0 }
 0x344   : > { %349 = vadd.xlane.f32.xlu2 %v348_v57 }
 0x34f   : > { %v525_v13 = vpop.permute.xlu1 %524 }
 0x35c   : > { %366 = vrot.lane.b32.xlu2 %v1427_v49, %s1266_s27 }
 0x364   : > { %394 = vrot.lane.b32.xlu2 %v1427_v49, %s1267_s28 }
 0x36c   : > { %632 = vrot.lane.b32.xlu2 %v1427_v49, %s1268_s29 }
 0x374   : > { %526 = vrot.lane.b32.xlu2 %v1427_v49, %s1269_s30 }
 0x3b7   : > { %v350_v58 = vpop.xlane.xlu2 %349 }
 0x3b8   : > { %1074 = vrcp.f32 %v350_v58  ;;  %v362_v63 = vand.u32 2147483648, %v350_v58  ;;  %v360_v2 = vand.u32 2147483647, %v350_v58  ;;  %vm356_vm10 = vweird.f32 %v350_v58 }
 0x3ba   : > { %v363_v4 = vor.u32 1.1754944e-38, %v362_v63  ;;  %vm361_vm12 = vcmp.eq.f32.partialorder %v360_v2, 8.507059e+37 }
 0x3be   : > { %v1075_v59 = vpop.eup %1074 }
 0x3bf   : > { %v352_v60 = vmul.f32 %v1075_v59, %v350_v58  ;;  %v367_v61 = vpop.permute.xlu2 %366  ;;  %vm357_vm9 = vweird.f32 %v1075_v59 }
 0x3c0   : > { %387 = vmatpush.msra.mxu2 %v367_v61  ;;  %vm358_vm11 = vmor %vm356_vm10, %vm357_vm9 }
 0x3c1   : > { %v353_v62 = vsub.f32 1.0, %v352_v60 }
 0x3c3   : > { %v354_v1 = vmul.f32 %v1075_v59, %v353_v62 }
 0x3c5   : > { %v355_v3 = vadd.f32 %v1075_v59, %v354_v1 }
 0x3c7   : > { %v395_v5 = vpop.permute.xlu2 %394  ;;  %v359_v6 = vsel %vm358_vm11, %v1075_v59, %v355_v3 }
 0x3c8   : > { %958 = vmatpush.xpose.msk.msrb.mxu0 %vm317_vm8, %v395_v5  ;;  %v364_v7 = vsel %vm361_vm12, %v363_v4, %v359_v6 }
 0x3c9   : > { %v365_v9 = vmul.f32 %v1073_v56, %v364_v7 }
 0x3cb   : > { %957 = vmatmul.msk.f32.vlgmr.msra.gmra.mxu2 %vm317_vm8, %v365_v9  ;;  %959 = vmatmul.msk.f32.vlgmr.msrb.gmra.mxu0 %vm317_vm8, %v393_v10 }
 0x3cf   : > { %v633_v11 = vpop.permute.xlu2 %632 }
 0x3d0   : > { %967 = vmatpush.xpose.msk.msrb.mxu3 %vm317_vm8, %v633_v11 }
 0x3d7   : > { %v527_v12 = vpop.permute.xlu2 %526 }
 0x3d8   : > { %963 = vmatpush.xpose.msk.msra.mxu0 %vm317_vm8, %v527_v12 }
 0x3db   : > { %964 = vmatmul.msk.f32.vlgmr.msra.gmra.mxu0 %vm317_vm8, %v525_v13 }
 0x448   : > { %v417_v16 = vpop.f32.mrf.mxu0 }
 0x449   : > { %v420_v18 = vsel %vm317_vm8, %v417_v16, -inf }
 0x44a   : > { %421 = vmax.xlane.f32.xlu0 %v420_v18 }
 0x44e   : > { %v389_v19 = vpop.f32.mrf.mxu2 }
 0x44f   : > { %962 = vmatmul.msk.f32.vlgmr.msra.gmra.mxu3 %vm317_vm8, %v389_v19 }
 0x457   : > { %968 = vmatmul.msk.f32.vlgmr.msrb.gmra.mxu3 %vm317_vm8, %v631_v20 }
 0x458   : > { %v549_v21 = vpop.f32.mrf.mxu0 }
 0x459   : > { %v552_v22 = vsel %vm317_vm8, %v549_v21, -inf }
 0x45a   : > { %553 = vmax.xlane.f32.xlu2 %v552_v22 }
 0x4bd   : > { %v422_v23 = vpop.xlane.xlu0 %421 }
 0x4be   : > { %v423_v24 = vsub.f32 %v417_v16, %v422_v23 }
 0x4c0   : > { %v424_v25 = vmul.f32 1.442695, %v423_v24 }
 0x4c2   : > { %1076 = vpow2.f32 %v424_v25 }
 0x4c8   : > { %v1077_v26 = vpop.eup %1076 }
 0x4c9   : > { %v426_v27 = vsel %vm317_vm8, %v1077_v26, 0.0 }
 0x4ca   : > { %427 = vadd.xlane.f32.xlu0 %v426_v27 }
 0x4cd   : > { %v554_v28 = vpop.xlane.xlu2 %553 }
 0x4ce   : > { %v555_v29 = vsub.f32 %v549_v21, %v554_v28 }
 0x4d0   : > { %v556_v30 = vmul.f32 1.442695, %v555_v29 }
 0x4d2   : > { %1078 = vpow2.f32 %v556_v30  ;;  %v1453_v31 = vpop.f32.mrf.mxu3  ;;  %v1061_v30 = vld [vmem:[#allocation7 + $0x3] ss:$0 sm:$0xff] }
 0x4d8   : > { %v1455_v32 = vpop.eup %1078 }
 0x4d9   : > { %v558_v33 = vsel %vm317_vm8, %v1455_v32, 0.0 }
 0x4da   : > { %559 = vadd.xlane.f32.xlu2 %v558_v33  ;;  %v655_v34 = vpop.f32.mrf.mxu3 }
 0x4db   : > { %v658_v35 = vsel %vm317_vm8, %v655_v34, -inf }
 0x4dc   : > { %659 = vmax.xlane.f32.xlu1 %v658_v35 }
 0x4f2   : > { %444 = vrot.lane.b32.xlu2 %v1427_v49, %s1270_s5 }
 0x4f5   : > { %682 = vrot.lane.b32.xlu1 %v1427_v49, %s1271_s6 }
 0x4fa   : > { %471 = vrot.lane.b32.xlu2 %v1421_v17, %s1261_s20 }
 0x502   : > { %603 = vrot.lane.b32.xlu2 %v1418_v15, %s1261_s20 }
 0x53d   : > { %v428_v36 = vpop.xlane.xlu0 %427 }
 0x53e   : > { %1080 = vrcp.f32 %v428_v36  ;;  %v440_v42 = vand.u32 2147483648, %v428_v36  ;;  %vm434_vm14 = vweird.f32 %v428_v36  ;;  %v438_v43 = vand.u32 2147483647, %v428_v36 }
 0x540   : > { %v441_v47 = vor.u32 1.1754944e-38, %v440_v42  ;;  %vm439_vm1 = vcmp.eq.f32.partialorder %v438_v43, 8.507059e+37 }
 0x544   : > { %v1081_v37 = vpop.eup %1080 }
 0x545   : > { %v430_v38 = vmul.f32 %v1081_v37, %v428_v36  ;;  %vm435_vm13 = vweird.f32 %v1081_v37 }
 0x546   : > { %vm436_vm15 = vmor %vm434_vm14, %vm435_vm13 }
 0x547   : > { %v431_v39 = vsub.f32 1.0, %v430_v38 }
 0x549   : > { %v432_v40 = vmul.f32 %v1081_v37, %v431_v39  ;;  %v227_v39 = vld [vmem:[#allocation5 + $0x50] sm:$0xff] }
 0x54b   : > { %v433_v41 = vadd.f32 %v1081_v37, %v432_v40  ;;  %v226_v40 = vld [vmem:[#allocation5 + $0x38] sm:$0xff] }
 0x54d   : > { %v560_v44 = vpop.xlane.xlu2 %559  ;;  %v437_v46 = vsel %vm436_vm15, %v1081_v37, %v433_v41  ;;  %v225_v41 = vld [vmem:[#allocation5 + $0x20] sm:$0xff] }
 0x54e   : > { %v442_v15 = vsel %vm439_vm1, %v441_v47, %v437_v46  ;;  %v572_v1 = vand.u32 2147483648, %v560_v44  ;;  %vm566_vm3 = vweird.f32 %v560_v44 }
 0x54f   : > { %v660_v45 = vpop.xlane.xlu1 %659  ;;  %v443_v51 = vmul.f32 %v1077_v26, %v442_v15 }
 0x550   : > { %v661_v17 = vsub.f32 %v655_v34, %v660_v45  ;;  %v573_v7 = vor.u32 1.1754944e-38, %v572_v1  ;;  %v1063_v1 = vld [vmem:[#allocation7 + $0x5] ss:$0 sm:$0xff] }
 0x552   : > { %v662_v48 = vmul.f32 1.442695, %v661_v17 }
 0x554   : > { %1082 = vpow2.f32 %v662_v48 }
 0x555   : > { %v445_v50 = vpop.permute.xlu2 %444  ;;  %1084 = vrcp.f32 %v560_v44 }
 0x556   : > { %465 = vmatpush.msrb.mxu2 %v445_v50 }
 0x557   : > { %960 = vmatmul.msk.f32.vlgmr.msrb.gmra.mxu2 %vm317_vm8, %v443_v51 }
 0x55a   : > { %v1083_v52 = vpop.eup %1082 }
 0x55b   : > { %v664_v53 = vsel %vm317_vm8, %v1083_v52, 0.0  ;;  %v1085_v56 = vpop.eup %1084 }
 0x55c   : > { %665 = vadd.xlane.f32.xlu0 %v664_v53  ;;  %v562_v57 = vmul.f32 %v1085_v56, %v560_v44  ;;  %vm567_vm2 = vweird.f32 %v1085_v56 }
 0x55d   : > { %v472_v55 = vpop.permute.xlu2 %471  ;;  %vm568_vm4 = vmor %vm566_vm3, %vm567_vm2 }
 0x55e   : > { %492 = vmatpush.msrb.mxu1 %v472_v55  ;;  %v563_v59 = vsub.f32 1.0, %v562_v57  ;;  %v1062_v57 = vld [vmem:[#allocation7 + $0x4] ss:$0 sm:$0xff] }
 0x560   : > { %v564_v60 = vmul.f32 %v1085_v56, %v563_v59 }
 0x562   : > { %v565_v63 = vadd.f32 %v1085_v56, %v564_v60 }
 0x564   : > { %v569_v6 = vsel %vm568_vm4, %v1085_v56, %v565_v63 }
 0x565   : > { %v604_v21 = vpop.permute.xlu2 %603 }
 0x566   : > { %624 = vmatpush.msra.mxu1 %v604_v21 }
 0x567   : > { %v683_v54 = vpop.permute.xlu1 %682 }
 0x568   : > { %703 = vmatpush.msrb.mxu0 %v683_v54 }
 0x570   : > { %576 = vrot.lane.b32.xlu0 %v1427_v49, %s1272_s17  ;;  %v570_v49 = vand.u32 2147483647, %v560_v44 }
 0x572   : > { %vm571_vm7 = vcmp.eq.f32.partialorder %v570_v49, 8.507059e+37 }
 0x573   : > { %v574_v11 = vsel %vm571_vm7, %v573_v7, %v569_v6  ;;  %v228_v6 = vld [vmem:[#allocation5 + $0x10] sm:$0xff]  ;;  %v1064_v7 = vld [vmem:[#allocation7 + $0x6] ss:$0 sm:$0xff] }
 0x574   : > { %v575_v19 = vmul.f32 %v1455_v32, %v574_v11 }
 0x578   : > { %709 = vrot.lane.b32.xlu0 %v1416_v14, %s1261_s20  ;;  %s218_s20 = scalar_lea.vmem [#allocation8], %s950_s21  ;;  %s1204_s21 = scalar_lea.hbm %s1527_s3, 16 }
 0x579   : > { %s850_s9 = sshll.u32 %s218_s20, 4  ;;  %p1206_p7 = scmp.lt.s32.totalorder %s1204_s21, %s1200_s26  ;;  %s851_s9 = int_to_ptr.vmem [resolvable:$true] %s850_s9 }
 0x57b   : > { %p1207_p8 = por %p1206_p7, %p1205_p12 }
 0x57d   : > { %p1208_p9 = pnand %p1207_p8, %p1203_p5 }
 0x5cf   : > { %v666_v58 = vpop.xlane.xlu0 %665 }
 0x5d0   : > { %1086 = vrcp.f32 %v666_v58  ;;  %v678_v3 = vand.u32 2147483648, %v666_v58  ;;  %v676_v5 = vand.u32 2147483647, %v666_v58  ;;  %vm672_vm6 = vweird.f32 %v666_v58 }
 0x5d2   : > { %v679_v10 = vor.u32 1.1754944e-38, %v678_v3  ;;  %vm677_vm10 = vcmp.eq.f32.partialorder %v676_v5, 8.507059e+37  ;;  %v229_v5 = vld [vmem:[#allocation5 + $0x28] sm:$0xff] }
 0x5d6   : > { %v1087_v61 = vpop.eup %1086 }
 0x5d7   : > { %v668_v62 = vmul.f32 %v1087_v61, %v666_v58  ;;  %vm673_vm5 = vweird.f32 %v1087_v61 }
 0x5d8   : > { %vm674_vm9 = vmor %vm672_vm6, %vm673_vm5 }
 0x5d9   : > { %v669_v2 = vsub.f32 1.0, %v668_v62 }
 0x5da   : > { %v467_v4 = vpop.f32.mrf.mxu2 }
 0x5db   : > { %v670_v14 = vmul.f32 %v1087_v61, %v669_v2  ;;  %961 = vmatmul.msk.f32.vlgmr.msrb.gmra.mxu1 %vm317_vm8, %v467_v4  ;;  %v231_v4 = vld [vmem:[#allocation5 + $0x58] sm:$0xff] }
 0x5dc   : > { %797 = vmatpush.msrb.mxu1 %v227_v39  ;;  %827 = vmatpush.xpose.msra.mxu3 %v231_v4 }
 0x5dd   : > { %v671_v9 = vadd.f32 %v1087_v61, %v670_v14  ;;  %v230_v14 = vld [vmem:[#allocation5 + $0x40] sm:$0xff] }
 0x5de   : > { %798 = vmatpush.msrb.mxu1 %v226_v40 }
 0x5df   : > { %v675_v12 = vsel %vm674_vm9, %v1087_v61, %v671_v9 }
 0x5e0   : > { %v680_v13 = vsel %vm677_vm10, %v679_v10, %v675_v12  ;;  %799 = vmatpush.msrb.mxu1 %v225_v41  ;;  %828 = vmatpush.xpose.msra.mxu3 %v230_v14 }
 0x5e1   : > { %v681_v16 = vmul.f32 %v1083_v52, %v680_v13 }
 0x5e2   : > { %v577_v18 = vpop.permute.xlu0 %576 }
 0x5e3   : > { %597 = vmatpush.msra.mxu2 %v577_v18  ;;  %969 = vmatmul.msk.f32.vlgmr.msrb.gmra.mxu0 %vm317_vm8, %v681_v16 }
 0x5e4   : > { %965 = vmatmul.msk.f32.vlgmr.msra.gmra.mxu2 %vm317_vm8, %v575_v19  ;;  %829 = vmatpush.xpose.msra.mxu3 %v229_v5 }
 0x5e8   : > { %830 = vmatpush.xpose.msra.mxu3 %v228_v6 }
 0x5ea   : > { %v710_v20 = vpop.permute.xlu0 %709 }
 0x5eb   : > { %730 = vmatpush.msrb.mxu2 %v710_v20 }
 0x658   : > { %v494_v24 = vpop.f32.mrf.mxu1 }
 0x659   : > { %v522_v25 = vadd.f32 %v1453_v31, %v494_v24 }
 0x660   : > { %v705_v22 = vpop.f32.mrf.mxu0 }
 0x661   : > { %970 = vmatmul.msk.f32.vlgmr.msrb.gmra.mxu2 %vm317_vm8, %v705_v22 }
 0x667   : > { %v599_v23 = vpop.f32.mrf.mxu2 }
 0x668   : > { %966 = vmatmul.msk.f32.vlgmr.msra.gmra.mxu1 %vm317_vm8, %v599_v23  ;;  %v1065_v23 = vld [vmem:[#allocation7 + $0x7] ss:$0 sm:$0xff] }
 0x6e4   : > { %v732_v28 = vpop.f32.mrf.mxu2 }
 0x6e5   : > { %v626_v26 = vpop.f32.mrf.mxu1 }
 0x6e6   : > { %v629_v27 = vadd.f32 %v626_v26, %v522_v25 }
 0x6e8   : > { %v735_v29 = vadd.f32 %v732_v28, %v629_v27 }
 0x6ea   : > { %v736_v32 = vadd.f32 %v735_v29, %v1407_v0  ;;  %v224_v0 = vld [vmem:[#allocation5 + $0x8] sm:$0xff] }
 0x6eb   : > { %800 = vmatpush.msrb.mxu1 %v224_v0 }
 0x6ec   : > { %v1479_v33 = vadd.f32 %v1061_v30, %v736_v32 }
 0x6ee   : > { %v739_v34 = vsel %vm240_vm0, %v1479_v33, 0.0 }
 0x6ef   : > { %740 = vadd.xlane.f32.xlu0 %v739_v34 }
 0x762   : > { %v741_v35 = vpop.xlane.xlu0 %740 }
 0x763   : > { %v742_v36 = vmul.f32 %v741_v35, %v1411_v8 }
 0x765   : > { %v743_v37 = vsub.f32 %v1479_v33, %v742_v36 }
 0x767   : > { %v744_v38 = vmul.f32 %v743_v37, %v743_v37  ;;  %v777_v62 = vmul.f32 %v1062_v57, %v743_v37 }
 0x769   : > { %v745_v31 = vsel %vm240_vm0, %v744_v38, 0.0 }
 0x76a   : > { %746 = vadd.xlane.f32.xlu1 %v745_v31 }
 0x7dd   : > { %v747_v42 = vpop.xlane.xlu1 %746 }
 0x7de   : > { %v748_v43 = vmul.f32 0.032258064, %v747_v42 }
 0x7e0   : > { %1088 = vrsqrt.f32 %v748_v43  ;;  %vm756_vm8 = vcmp.eq.f32.partialorder %v748_v43, inf  ;;  %v759_v15 = vand.u32 2147483648, %v748_v43  ;;  %vm758_vm11 = vcmp.eq.f32.partialorder %v748_v43, 0.0 }
 0x7e6   : > { %v1089_v44 = vpop.eup %1088 }
 0x7e7   : > { %v750_v45 = vmul.f32 %v1089_v44, %v748_v43 }
 0x7e9   : > { %v751_v8 = vmul.f32 %v1089_v44, %v750_v45 }
 0x7eb   : > { %v752_v46 = vmul.f32 0.5, %v751_v8 }
 0x7ed   : > { %v753_v47 = vsub.f32 1.5, %v752_v46 }
 0x7ef   : > { %v754_v17 = vmul.f32 %v1089_v44, %v753_v47 }
 0x7f1   : > { %v755_v48 = vmul.f32 %v754_v17, %v748_v43 }
 0x7f3   : > { %v757_v50 = vsel %vm756_vm8, %v748_v43, %v755_v48 }
 0x7f4   : > { %v760_v51 = vsel %vm758_vm11, %v759_v15, %v757_v50 }
 0x7f5   : > { %v761_v52 = vadd.f32 1e-06, %v760_v51 }
 0x7f7   : > { %1090 = vrcp.f32 %v761_v52  ;;  %v773_v56 = vand.u32 2147483648, %v761_v52  ;;  %v771_v59 = vand.u32 2147483647, %v761_v52  ;;  %vm767_vm13 = vweird.f32 %v761_v52 }
 0x7f9   : > { %v774_v61 = vor.u32 1.1754944e-38, %v773_v56  ;;  %vm772_vm15 = vcmp.eq.f32.partialorder %v771_v59, 8.507059e+37 }
 0x7fd   : > { %v1091_v53 = vpop.eup %1090 }
 0x7fe   : > { %v763_v54 = vmul.f32 %v1091_v53, %v761_v52  ;;  %vm768_vm12 = vweird.f32 %v1091_v53 }
 0x7ff   : > { %vm769_vm14 = vmor %vm767_vm13, %vm768_vm12 }
 0x800   : > { %v764_v55 = vsub.f32 1.0, %v763_v54 }
 0x802   : > { %v765_v58 = vmul.f32 %v1091_v53, %v764_v55 }
 0x804   : > { %v766_v60 = vadd.f32 %v1091_v53, %v765_v58 }
 0x806   : > { %v770_v63 = vsel %vm769_vm14, %v1091_v53, %v766_v60 }
 0x807   : > { %v775_v2 = vsel %vm772_vm15, %v774_v61, %v770_v63 }
 0x808   : > { %v778_v49 = vmul.f32 %v777_v62, %v775_v2 }
 0x80a   : > { %v780_v3 = vadd.f32 %v1063_v1, %v778_v49 }
 0x80c   : > { %971 = vmatmul.msk.f32.vlgmr.msrb.gmra.mxu1 %vm240_vm0, %v780_v3 }
 0x889   : > { %v802_v9 = vpop.f32.mrf.mxu1 }
 0x88a   : > { %v803_v10 = vadd.f32 %v1064_v7, %v802_v9 }
 0x88c   : > { %v806_v11 = vmul.f32 0.044715, %v803_v10  ;;  %v805_v20 = vmul.f32 0.5, %v803_v10 }
 0x88e   : > { %v807_v12 = vmul.f32 %v806_v11, %v803_v10 }
 0x890   : > { %v808_v13 = vmul.f32 %v807_v12, %v803_v10 }
 0x892   : > { %v809_v16 = vadd.f32 %v808_v13, %v803_v10 }
 0x894   : > { %v810_v18 = vmul.f32 0.7978846, %v809_v16 }
 0x896   : > { %1092 = vtanh.f32 %v810_v18 }
 0x89c   : > { %v1093_v19 = vpop.eup %1092 }
 0x89d   : > { %v812_v21 = vadd.f32 1.0, %v1093_v19 }
 0x89f   : > { %v813_v22 = vmul.f32 %v812_v21, %v805_v20 }
 0x8a1   : > { %831 = vmatmul.f32.vlgmr.msra.gmra.mxu3 %v813_v22 }
 0x924   : > { %v832_v24 = vpop.f32.mrf.mxu3 }
 0x925   : > { %v833_v25 = vadd.f32 %v1065_v23, %v832_v24 }
 0x927   : > { %v835_v26 = vadd.f32 %v833_v25, %v1479_v33 }
 0x929   : > { %836 = vst.msk [vmem:[%s218_s20] sm:$0xff] %vm240_vm0, %v835_v26 }
 0x92a   : > { %1211 = shalt.err (!%p1208_p9)
}
 0x92b   : > { %986 = dma.vmem_to_hbm [thread:$0]  (%p1362_p4), %s851_s9, 128, %s853_s24, %s838_s25  }
 0x92c PF: > { %s864_s10 = sand.u32 1, %s1242_s12   ;;  %p1534_p10 = scmp.ge.s32.totalorder %s1254_s15, 2 }
 0x92d   : > { %s865_s5 = scalar_lea.sflag [#allocation4], %s864_s10 }
 0x92e   : > { %p1000_p13 = pnand %p1534_p10, %p1366_p6 }
 0x930   : > { %p1001_p11 = pneg %p1000_p13 }
 0x932   : > { %1237 = dma.done.wait (%p1001_p11), %s865_s5, 128  }
 0x933   : > { %1239 = vsyncadd (%p1001_p11), %s865_s5, 4294967168  ;;  %p17_p0 = scmp.ge.s32.totalorder %s1336_s4, 4   ;;  %s1535_s12 = smov %s1246_s13 }
 0x934   : > { %s1536_s13 = smov %s1250_s14  ;;  %s1537_s14 = smov %s1347_s7 }
 0x935   : > { %s1538_s15 = smov %s1336_s4  ;;  %19 = sbr.rel (!%p17_p0) target bundleno = 6 (0x6), region = 85 }
 0x93a   :  { %871 = vsyncpa [#allocation3], 1 }
 0x93b   :  { %873 = vsyncpa [#allocation3 + $0x1], 1 }
 0x93c   :  { %874 = vsyncpa [#allocation6], 1 }
 0x93d   :  { %875 = vsyncpa [#allocation4], 1 }
 0x93e   :  { %877 = vsyncpa [#allocation4 + $0x1], 1 }

</bundles_post_ra>
